<compile_context>
chip_gen: v7x
topology: tpu7x:2x2x1
jax: 0.10.0
libtpu: 0.0.40
codegen_flags: <defaults>
</compile_context>

<pallas_src>
import functools

import jax
import jax.numpy as jnp
import numpy as np
from jax import lax
from jax.experimental import pallas as pl
from jax.experimental.pallas import tpu as pltpu

EPS = 1e-5                     # nn.BatchNorm2d default eps
TM_TARGET = 128                # rows of M per grid step.  Sweep per generation:
                               # v5e prefers >=512; on v7x keep (tiles * 2 buffers) << 64 MiB.
VMEM_LIMIT = 32 * 1024 * 1024  # explicit scoped-VMEM budget (safe on v5e/v6e/v7x)


def _cp():
    return pltpu.CompilerParams(dimension_semantics=("parallel",),
                                vmem_limit_bytes=VMEM_LIMIT)


# ---------------------------------------------------------------------------
# Pallas kernels
# ---------------------------------------------------------------------------
def matmul_stats_kernel(p_ref, w_ref, y_ref, stats_ref):
    """y_tile = patches_tile @ W (bf16 in, f32 accumulate) + per-tile BN partial stats."""
    y = jnp.dot(p_ref[...], w_ref[...], preferred_element_type=jnp.float32)
    y_ref[...] = y
    stats_ref[0:1, :] = jnp.sum(y, axis=0, keepdims=True)        # per-channel sum
    stats_ref[1:2, :] = jnp.sum(y * y, axis=0, keepdims=True)    # per-channel sum of squares


def scale_relu_kernel(y_ref, s_ref, b_ref, o_ref):
    """BN applied as folded per-channel affine, then ReLU (conv1 epilogue)."""
    o_ref[...] = jnp.maximum(y_ref[...] * s_ref[...] + b_ref[...], 0.0)


def tail_proj_kernel(cout, y_ref, s_ref, b_ref, o_ref):
    """Normalize fused [conv2 | 1x1-proj] halves, add them, final ReLU."""
    z = y_ref[...] * s_ref[...] + b_ref[...]
    o_ref[...] = jnp.maximum(z[:, :cout] + z[:, cout:], 0.0)


def tail_ident_kernel(y_ref, x_ref, s_ref, b_ref, o_ref):
    """Normalize conv2, add identity shortcut, final ReLU."""
    o_ref[...] = jnp.maximum(y_ref[...] * s_ref[...] + b_ref[...] + x_ref[...], 0.0)


# ---------------------------------------------------------------------------
# pallas_call wrappers (tiled over M rows; weights / per-channel params stay resident)
# ---------------------------------------------------------------------------
def _matmul_stats_call(p_bf16, w_bf16, tm):
    mp, k = p_bf16.shape
    c = w_bf16.shape[1]
    nt = mp // tm
    return pl.pallas_call(
        matmul_stats_kernel,
        out_shape=(jax.ShapeDtypeStruct((mp, c), jnp.float32),
                   jax.ShapeDtypeStruct((nt, 2, c), jnp.float32)),
        grid=(nt,),
        in_specs=[pl.BlockSpec((tm, k), lambda i: (i, 0)),
                  pl.BlockSpec((k, c), lambda i: (0, 0))],
        out_specs=(pl.BlockSpec((tm, c), lambda i: (i, 0)),
                   pl.BlockSpec((None, 2, c), lambda i: (i, 0, 0))),
        compiler_params=_cp(),
    )(p_bf16, w_bf16)


def _scale_relu_call(y, scale, bias, tm):
    mp, c = y.shape
    nt = mp // tm
    return pl.pallas_call(
        scale_relu_kernel,
        out_shape=jax.ShapeDtypeStruct((mp, c), jnp.float32),
        grid=(nt,),
        in_specs=[pl.BlockSpec((tm, c), lambda i: (i, 0)),
                  pl.BlockSpec((1, c), lambda i: (0, 0)),
                  pl.BlockSpec((1, c), lambda i: (0, 0))],
        out_specs=pl.BlockSpec((tm, c), lambda i: (i, 0)),
        compiler_params=_cp(),
    )(y, scale, bias)


def _tail_proj_call(y2, scale, bias, tm, cout):
    mp, c2 = y2.shape
    nt = mp // tm
    return pl.pallas_call(
        functools.partial(tail_proj_kernel, cout),
        out_shape=jax.ShapeDtypeStruct((mp, cout), jnp.float32),
        grid=(nt,),
        in_specs=[pl.BlockSpec((tm, c2), lambda i: (i, 0)),
                  pl.BlockSpec((1, c2), lambda i: (0, 0)),
                  pl.BlockSpec((1, c2), lambda i: (0, 0))],
        out_specs=pl.BlockSpec((tm, cout), lambda i: (i, 0)),
        compiler_params=_cp(),
    )(y2, scale, bias)


def _tail_ident_call(y2, x_flat, scale, bias, tm):
    mp, c = y2.shape
    nt = mp // tm
    return pl.pallas_call(
        tail_ident_kernel,
        out_shape=jax.ShapeDtypeStruct((mp, c), jnp.float32),
        grid=(nt,),
        in_specs=[pl.BlockSpec((tm, c), lambda i: (i, 0)),
                  pl.BlockSpec((tm, c), lambda i: (i, 0)),
                  pl.BlockSpec((1, c), lambda i: (0, 0)),
                  pl.BlockSpec((1, c), lambda i: (0, 0))],
        out_specs=pl.BlockSpec((tm, c), lambda i: (i, 0)),
        compiler_params=_cp(),
    )(y2, x_flat, scale, bias)


# ---------------------------------------------------------------------------
# Plain-JAX glue: im2col, weight layout, BN stat folding, padding helpers
# ---------------------------------------------------------------------------
def _im2col_3x3(x_nhwc):
    n, h, w, c = x_nhwc.shape
    xp = jnp.pad(x_nhwc, ((0, 0), (1, 1), (1, 1), (0, 0)))
    cols = [xp[:, dy:dy + h, dx:dx + w, :].reshape(n * h * w, c)
            for dy in range(3) for dx in range(3)]
    return jnp.concatenate(cols, axis=1)                      # (M, 9*C)


def _w3x3_to_mat(w_oihw):
    cout, cin = w_oihw.shape[0], w_oihw.shape[1]
    return jnp.transpose(w_oihw, (2, 3, 1, 0)).reshape(9 * cin, cout)


def _fold_bn(stats, m_true, gamma, beta):
    """Partial (sum, sumsq) tiles -> per-channel (scale, bias) for y*scale + bias."""
    s = jnp.sum(stats, axis=0)                                # (2, C)
    mean = s[0] / m_true
    var = jnp.maximum(s[1] / m_true - mean * mean, 0.0)       # biased var, clamped
    scale = gamma * lax.rsqrt(var + EPS)
    bias = beta - mean * scale
    return (scale.reshape(1, -1).astype(jnp.float32),
            bias.reshape(1, -1).astype(jnp.float32))


def _choose_tile(m):
    tm = min(TM_TARGET, m)
    return -(-tm // 8) * 8                                    # multiple of 8 sublanes


def _pad_rows(a, mp):
    m = a.shape[0]
    return a if m == mp else jnp.pad(a, ((0, mp - m), (0, 0)))


@jax.jit
def residual_block(x_nchw, params):
    n, cin, h, w = x_nchw.shape
    cout = params["w1"].shape[0]
    m = n * h * w
    tm = _choose_tile(m)
    mp = -(-m // tm) * tm                                     # padded rows (zeros do not
                                                              # perturb BN stats: /m below)
    x = jnp.transpose(x_nchw, (0, 2, 3, 1)).astype(jnp.float32)   # NHWC

    # ---- conv1 (3x3, pad=1) : matmul + partial BN stats, then fold + normalize + ReLU ----
    p1 = _pad_rows(_im2col_3x3(x), mp).astype(jnp.bfloat16)
    w1 = _w3x3_to_mat(params["w1"]).astype(jnp.bfloat16)
    # Conv biases b1/b2/bs are cancelled exactly by the BN mean subtraction -> not passed.
    y1, st1 = _matmul_stats_call(p1, w1, tm)
    sc1, bi1 = _fold_bn(st1, m, params["g1"], params["be1"])
    h1 = _scale_relu_call(y1, sc1, bi1, tm)[:m]

    # ---- conv2 (3x3) fused with the shortcut path ----
    p2 = _im2col_3x3(h1.reshape(n, h, w, cout))               # (M, 9*Cout)
    w2 = _w3x3_to_mat(params["w2"])
    has_proj = cin != cout
    if has_proj:
        # one matmul for both conv2 and the 1x1 projection: [p2 | x] @ [[W2,0],[0,Ws]]
        x_flat = x.reshape(m, cin)
        pcat = _pad_rows(jnp.concatenate([p2, x_flat], axis=1), mp).astype(jnp.bfloat16)
        ws = jnp.transpose(params["ws"][:, :, 0, 0], (1, 0))  # (Cin, Cout)
        wcat = jnp.zeros((9 * cout + cin, 2 * cout), jnp.float32)
        wcat = wcat.at[:9 * cout, :cout].set(w2).at[9 * cout:, cout:].set(ws)
        y2, st2 = _matmul_stats_call(pcat, wcat.astype(jnp.bfloat16), tm)
        g = jnp.concatenate([params["g2"], params["gs"]])
        be = jnp.concatenate([params["be2"], params["bes"]])
        sc2, bi2 = _fold_bn(st2, m, g, be)
        out_flat = _tail_proj_call(y2, sc2, bi2, tm, cout)[:m]
    else:
        p2p = _pad_rows(p2, mp).astype(jnp.bfloat16)
        y2, st2 = _matmul_stats_call(p2p, w2.astype(jnp.bfloat16), tm)
        sc2, bi2 = _fold_bn(st2, m, params["g2"], params["be2"])
        x_pad = _pad_rows(x.reshape(m, cin), mp)
        out_flat = _tail_ident_call(y2, x_pad, sc2, bi2, tm)[:m]

    return jnp.transpose(out_flat.reshape(n, h, w, cout), (0, 3, 1, 2))   # back to NCHW


# ---------------------------------------------------------------------------
# Pure-JAX reference (same training-mode BN semantics, f32 HIGHEST, WITH conv biases)
# ---------------------------------------------------------------------------
def reference_block(x_nchw, params):
    dn = ("NCHW", "OIHW", "NCHW")
    prec = lax.Precision.HIGHEST

    def conv(x, w, b, pad):
        y = lax.conv_general_dilated(x, w, (1, 1), ((pad, pad), (pad, pad)),
                                     dimension_numbers=dn, precision=prec)
        return y + b[None, :, None, None]

    def bn(x, g, beta):
        mean = jnp.mean(x, axis=(0, 2, 3), keepdims=True)
        var = jnp.var(x, axis=(0, 2, 3), keepdims=True)
        return ((x - mean) / jnp.sqrt(var + EPS)) * g[None, :, None, None] \
            + beta[None, :, None, None]

    h = jax.nn.relu(bn(conv(x_nchw, params["w1"], params["b1"], 1),
                       params["g1"], params["be1"]))
    o = bn(conv(h, params["w2"], params["b2"], 1), params["g2"], params["be2"])
    cin, cout = x_nchw.shape[1], params["w1"].shape[0]
    if cin != cout:
        s = bn(conv(x_nchw, params["ws"], params["bs"], 0),
               params["gs"], params["bes"])
    else:
        s = x_nchw
    return jax.nn.relu(o + s)


# ---------------------------------------------------------------------------
if __name__ == "__main__":
    def uinit(k, shape, fan_in):
        bound = 1.0 / (fan_in ** 0.5)
        return jax.random.uniform(k, shape, jnp.float32, -bound, bound)

    def make_params(key, cin, cout):
        ks = jax.random.split(key, 6)
        p = dict(
            w1=uinit(ks[0], (cout, cin, 3, 3), cin * 9),
            b1=uinit(ks[1], (cout,), cin * 9),
            g1=jnp.ones((cout,), jnp.float32), be1=jnp.zeros((cout,), jnp.float32),
            w2=uinit(ks[2], (cout, cout, 3, 3), cout * 9),
            b2=uinit(ks[3], (cout,), cout * 9),
            g2=jnp.ones((cout,), jnp.float32), be2=jnp.zeros((cout,), jnp.float32),
        )
        if cin != cout:
            p.update(
                ws=uinit(ks[4], (cout, cin, 1, 1), cin),
                bs=uinit(ks[5], (cout,), cin),
                gs=jnp.ones((cout,), jnp.float32), bes=jnp.zeros((cout,), jnp.float32),
            )
        return p

    key = jax.random.PRNGKey(0)
    k1, k2, k3, k4 = jax.random.split(key, 4)

    # case 1: projection shortcut (Cin != Cout)
    x1 = jax.random.normal(k1, (2, 4, 16, 16), jnp.float32)
    p1 = make_params(k2, 4, 8)
    out1 = jax.block_until_ready(residual_block(x1, p1))
    assert out1.shape == (2, 8, 16, 16)
    ref1 = jax.block_until_ready(reference_block(x1, p1))
    np.testing.assert_allclose(np.asarray(out1), np.asarray(ref1), rtol=2e-2, atol=2e-2)

    # case 2: identity shortcut (Cin == Cout)
    x2 = jax.random.normal(k3, (2, 8, 16, 16), jnp.float32)
    p2 = make_params(k4, 8, 8)
    out2 = jax.block_until_ready(residual_block(x2, p2))
    assert out2.shape == (2, 8, 16, 16)
    ref2 = jax.block_until_ready(reference_block(x2, p2))
    np.testing.assert_allclose(np.asarray(out2), np.asarray(ref2), rtol=2e-2, atol=2e-2)

    print("KERNEL_OK")
</pallas_src>

<mosaic_0001>
module attributes {stable_mosaic.version = 11 : i64} {
  func.func @matmul_stats_kernel(%arg0: i32, %arg1: memref<128x36xbf16, #tpu.memory_space<vmem>>, %arg2: memref<36x8xbf16, #tpu.memory_space<vmem>>, %arg3: memref<128x8xf32, #tpu.memory_space<vmem>>, %arg4: memref<1x2x8xf32, #tpu.memory_space<vmem>>) attributes {dimension_semantics = [#tpu.dimension_semantics<parallel>], iteration_bounds = array<i64: 4>, scalar_prefetch = 0 : i64, scratch_operands = 0 : i64, tpu.core_type = #tpu.core_type<tc>, window_params = [{transform_indices = @transform_0, window_bounds = array<i64: 128, 36>}, {pipeline_mode = #tpu.pipeline_mode<synchronous>, transform_indices = @transform_1, window_bounds = array<i64: 36, 8>}, {transform_indices = @transform_2, window_bounds = array<i64: 128, 8>}, {transform_indices = @transform_3, window_bounds = array<i64: 1, 2, 8>}]} {
    %c0 = arith.constant 0 : index
    %c0_0 = arith.constant 0 : index
    %0 = vector.load %arg1[%c0, %c0_0] : memref<128x36xbf16, #tpu.memory_space<vmem>>, vector<128x36xbf16>
    %c0_1 = arith.constant 0 : index
    %c0_2 = arith.constant 0 : index
    %1 = vector.load %arg2[%c0_1, %c0_2] : memref<36x8xbf16, #tpu.memory_space<vmem>>, vector<36x8xbf16>
    %cst = arith.constant dense<0.000000e+00> : vector<128x8xf32>
    %2 = tpu.matmul %0, %1, %cst {dimension_numbers = #tpu.dot_dimension_numbers<[1], [0], [0], [1], [0, 0, 1, 1], [], []>} : vector<128x36xbf16>, vector<36x8xbf16>, vector<128x8xf32> -> vector<128x8xf32>
    %c0_3 = arith.constant 0 : index
    %c0_4 = arith.constant 0 : index
    %3 = vector.load %arg3[%c0_3, %c0_4] : memref<128x8xf32, #tpu.memory_space<vmem>>, vector<128x8xf32>
    tpu.vector_store %arg3[%c0_3, %c0_4], %2 {strides = array<i32>} : memref<128x8xf32, #tpu.memory_space<vmem>>, vector<128x8xf32>,
    %cst_5 = arith.constant dense<0.000000e+00> : vector<8xf32>
    %4 = vector.multi_reduction <add>, %2, %cst_5 [0] : vector<128x8xf32> to vector<8xf32>
    %5 = vector.shape_cast %4 : vector<8xf32> to vector<1x8xf32>
    %c0_6 = arith.constant 0 : index
    %c0_7 = arith.constant 0 : index
    %c0_8 = arith.constant 0 : index
    %6 = vector.load %arg4[%c0_6, %c0_7, %c0_8] : memref<1x2x8xf32, #tpu.memory_space<vmem>>, vector<1x1x8xf32>
    %7 = vector.shape_cast %6 : vector<1x1x8xf32> to vector<1x8xf32>
    %8 = vector.shape_cast %5 : vector<1x8xf32> to vector<1x1x8xf32>
    tpu.vector_store %arg4[%c0_6, %c0_7, %c0_8], %8 {strides = array<i32>} : memref<1x2x8xf32, #tpu.memory_space<vmem>>, vector<1x1x8xf32>,
    %9 = arith.mulf %2, %2 : vector<128x8xf32>
    %cst_9 = arith.constant dense<0.000000e+00> : vector<8xf32>
    %10 = vector.multi_reduction <add>, %9, %cst_9 [0] : vector<128x8xf32> to vector<8xf32>
    %11 = vector.shape_cast %10 : vector<8xf32> to vector<1x8xf32>
    %c0_10 = arith.constant 0 : index
    %c1 = arith.constant 1 : index
    %c0_11 = arith.constant 0 : index
    %12 = vector.load %arg4[%c0_10, %c1, %c0_11] : memref<1x2x8xf32, #tpu.memory_space<vmem>>, vector<1x1x8xf32>
    %13 = vector.shape_cast %12 : vector<1x1x8xf32> to vector<1x8xf32>
    %14 = vector.shape_cast %11 : vector<1x8xf32> to vector<1x1x8xf32>
    tpu.vector_store %arg4[%c0_10, %c1, %c0_11], %14 {strides = array<i32>} : memref<1x2x8xf32, #tpu.memory_space<vmem>>, vector<1x1x8xf32>,
    return
  }
  func.func @transform_0(%arg0: i32) -> (i32, i32) {
    %c0_i32 = arith.constant 0 : i32
    %c0_i32_0 = arith.constant 0 : i32
    return %arg0, %c0_i32 : i32, i32
  }
  func.func @transform_1(%arg0: i32) -> (i32, i32) {
    %c0_i32 = arith.constant 0 : i32
    %c0_i32_0 = arith.constant 0 : i32
    %c0_i32_1 = arith.constant 0 : i32
    return %c0_i32, %c0_i32_0 : i32, i32
  }
  func.func @transform_2(%arg0: i32) -> (i32, i32) {
    %c0_i32 = arith.constant 0 : i32
    %c0_i32_0 = arith.constant 0 : i32
    return %arg0, %c0_i32 : i32, i32
  }
  func.func @transform_3(%arg0: i32) -> (i32, i32, i32) {
    %c0_i32 = arith.constant 0 : i32
    %c0_i32_0 = arith.constant 0 : i32
    %c0_i32_1 = arith.constant 0 : i32
    return %arg0, %c0_i32, %c0_i32_0 : i32, i32, i32
  }
}

module attributes {stable_mosaic.version = 11 : i64} {
  func.func @scale_relu_kernel(%arg0: i32, %arg1: memref<128x8xf32, #tpu.memory_space<vmem>>, %arg2: memref<1x8xf32, #tpu.memory_space<vmem>>, %arg3: memref<1x8xf32, #tpu.memory_space<vmem>>, %arg4: memref<128x8xf32, #tpu.memory_space<vmem>>) attributes {dimension_semantics = [#tpu.dimension_semantics<parallel>], iteration_bounds = array<i64: 4>, scalar_prefetch = 0 : i64, scratch_operands = 0 : i64, tpu.core_type = #tpu.core_type<tc>, window_params = [{transform_indices = @transform_0, window_bounds = array<i64: 128, 8>}, {pipeline_mode = #tpu.pipeline_mode<synchronous>, transform_indices = @transform_1, window_bounds = array<i64: 1, 8>}, {pipeline_mode = #tpu.pipeline_mode<synchronous>, transform_indices = @transform_2, window_bounds = array<i64: 1, 8>}, {transform_indices = @transform_3, window_bounds = array<i64: 128, 8>}]} {
    %c0 = arith.constant 0 : index
    %c0_0 = arith.constant 0 : index
    %0 = vector.load %arg1[%c0, %c0_0] : memref<128x8xf32, #tpu.memory_space<vmem>>, vector<128x8xf32>
    %c0_1 = arith.constant 0 : index
    %c0_2 = arith.constant 0 : index
    %1 = vector.load %arg2[%c0_1, %c0_2] : memref<1x8xf32, #tpu.memory_space<vmem>>, vector<1x8xf32>
    %2 = vector.broadcast %1 : vector<1x8xf32> to vector<128x8xf32>
    %3 = arith.mulf %0, %2 : vector<128x8xf32>
    %c0_3 = arith.constant 0 : index
    %c0_4 = arith.constant 0 : index
    %4 = vector.load %arg3[%c0_3, %c0_4] : memref<1x8xf32, #tpu.memory_space<vmem>>, vector<1x8xf32>
    %5 = vector.broadcast %4 : vector<1x8xf32> to vector<128x8xf32>
    %6 = arith.addf %3, %5 : vector<128x8xf32>
    %cst = arith.constant 0.000000e+00 : f32
    %7 = vector.broadcast %cst : f32 to vector<128x8xf32>
    %8 = arith.maximumf %6, %7 : vector<128x8xf32>
    %c0_5 = arith.constant 0 : index
    %c0_6 = arith.constant 0 : index
    %9 = vector.load %arg4[%c0_5, %c0_6] : memref<128x8xf32, #tpu.memory_space<vmem>>, vector<128x8xf32>
    tpu.vector_store %arg4[%c0_5, %c0_6], %8 {strides = array<i32>} : memref<128x8xf32, #tpu.memory_space<vmem>>, vector<128x8xf32>,
    return
  }
  func.func @transform_0(%arg0: i32) -> (i32, i32) {
    %c0_i32 = arith.constant 0 : i32
    %c0_i32_0 = arith.constant 0 : i32
    return %arg0, %c0_i32 : i32, i32
  }
  func.func @transform_1(%arg0: i32) -> (i32, i32) {
    %c0_i32 = arith.constant 0 : i32
    %c0_i32_0 = arith.constant 0 : i32
    %c0_i32_1 = arith.constant 0 : i32
    return %c0_i32, %c0_i32_0 : i32, i32
  }
  func.func @transform_2(%arg0: i32) -> (i32, i32) {
    %c0_i32 = arith.constant 0 : i32
    %c0_i32_0 = arith.constant 0 : i32
    %c0_i32_1 = arith.constant 0 : i32
    return %c0_i32, %c0_i32_0 : i32, i32
  }
  func.func @transform_3(%arg0: i32) -> (i32, i32) {
    %c0_i32 = arith.constant 0 : i32
    %c0_i32_0 = arith.constant 0 : i32
    return %arg0, %c0_i32 : i32, i32
  }
}

module attributes {stable_mosaic.version = 11 : i64} {
  func.func @matmul_stats_kernel(%arg0: i32, %arg1: memref<128x76xbf16, #tpu.memory_space<vmem>>, %arg2: memref<76x16xbf16, #tpu.memory_space<vmem>>, %arg3: memref<128x16xf32, #tpu.memory_space<vmem>>, %arg4: memref<1x2x16xf32, #tpu.memory_space<vmem>>) attributes {dimension_semantics = [#tpu.dimension_semantics<parallel>], iteration_bounds = array<i64: 4>, scalar_prefetch = 0 : i64, scratch_operands = 0 : i64, tpu.core_type = #tpu.core_type<tc>, window_params = [{transform_indices = @transform_0, window_bounds = array<i64: 128, 76>}, {pipeline_mode = #tpu.pipeline_mode<synchronous>, transform_indices = @transform_1, window_bounds = array<i64: 76, 16>}, {transform_indices = @transform_2, window_bounds = array<i64: 128, 16>}, {transform_indices = @transform_3, window_bounds = array<i64: 1, 2, 16>}]} {
    %c0 = arith.constant 0 : index
    %c0_0 = arith.constant 0 : index
    %0 = vector.load %arg1[%c0, %c0_0] : memref<128x76xbf16, #tpu.memory_space<vmem>>, vector<128x76xbf16>
    %c0_1 = arith.constant 0 : index
    %c0_2 = arith.constant 0 : index
    %1 = vector.load %arg2[%c0_1, %c0_2] : memref<76x16xbf16, #tpu.memory_space<vmem>>, vector<76x16xbf16>
    %cst = arith.constant dense<0.000000e+00> : vector<128x16xf32>
    %2 = tpu.matmul %0, %1, %cst {dimension_numbers = #tpu.dot_dimension_numbers<[1], [0], [0], [1], [0, 0, 1, 1], [], []>} : vector<128x76xbf16>, vector<76x16xbf16>, vector<128x16xf32> -> vector<128x16xf32>
    %c0_3 = arith.constant 0 : index
    %c0_4 = arith.constant 0 : index
    %3 = vector.load %arg3[%c0_3, %c0_4] : memref<128x16xf32, #tpu.memory_space<vmem>>, vector<128x16xf32>
    tpu.vector_store %arg3[%c0_3, %c0_4], %2 {strides = array<i32>} : memref<128x16xf32, #tpu.memory_space<vmem>>, vector<128x16xf32>,
    %cst_5 = arith.constant dense<0.000000e+00> : vector<16xf32>
    %4 = vector.multi_reduction <add>, %2, %cst_5 [0] : vector<128x16xf32> to vector<16xf32>
    %5 = vector.shape_cast %4 : vector<16xf32> to vector<1x16xf32>
    %c0_6 = arith.constant 0 : index
    %c0_7 = arith.constant 0 : index
    %c0_8 = arith.constant 0 : index
    %6 = vector.load %arg4[%c0_6, %c0_7, %c0_8] : memref<1x2x16xf32, #tpu.memory_space<vmem>>, vector<1x1x16xf32>
    %7 = vector.shape_cast %6 : vector<1x1x16xf32> to vector<1x16xf32>
    %8 = vector.shape_cast %5 : vector<1x16xf32> to vector<1x1x16xf32>
    tpu.vector_store %arg4[%c0_6, %c0_7, %c0_8], %8 {strides = array<i32>} : memref<1x2x16xf32, #tpu.memory_space<vmem>>, vector<1x1x16xf32>,
    %9 = arith.mulf %2, %2 : vector<128x16xf32>
    %cst_9 = arith.constant dense<0.000000e+00> : vector<16xf32>
    %10 = vector.multi_reduction <add>, %9, %cst_9 [0] : vector<128x16xf32> to vector<16xf32>
    %11 = vector.shape_cast %10 : vector<16xf32> to vector<1x16xf32>
    %c0_10 = arith.constant 0 : index
    %c1 = arith.constant 1 : index
    %c0_11 = arith.constant 0 : index
    %12 = vector.load %arg4[%c0_10, %c1, %c0_11] : memref<1x2x16xf32, #tpu.memory_space<vmem>>, vector<1x1x16xf32>
    %13 = vector.shape_cast %12 : vector<1x1x16xf32> to vector<1x16xf32>
    %14 = vector.shape_cast %11 : vector<1x16xf32> to vector<1x1x16xf32>
    tpu.vector_store %arg4[%c0_10, %c1, %c0_11], %14 {strides = array<i32>} : memref<1x2x16xf32, #tpu.memory_space<vmem>>, vector<1x1x16xf32>,
    return
  }
  func.func @transform_0(%arg0: i32) -> (i32, i32) {
    %c0_i32 = arith.constant 0 : i32
    %c0_i32_0 = arith.constant 0 : i32
    return %arg0, %c0_i32 : i32, i32
  }
  func.func @transform_1(%arg0: i32) -> (i32, i32) {
    %c0_i32 = arith.constant 0 : i32
    %c0_i32_0 = arith.constant 0 : i32
    %c0_i32_1 = arith.constant 0 : i32
    return %c0_i32, %c0_i32_0 : i32, i32
  }
  func.func @transform_2(%arg0: i32) -> (i32, i32) {
    %c0_i32 = arith.constant 0 : i32
    %c0_i32_0 = arith.constant 0 : i32
    return %arg0, %c0_i32 : i32, i32
  }
  func.func @transform_3(%arg0: i32) -> (i32, i32, i32) {
    %c0_i32 = arith.constant 0 : i32
    %c0_i32_0 = arith.constant 0 : i32
    %c0_i32_1 = arith.constant 0 : i32
    return %arg0, %c0_i32, %c0_i32_0 : i32, i32, i32
  }
}

module attributes {stable_mosaic.version = 11 : i64} {
  func.func @tail_proj_kernel(%arg0: i32, %arg1: memref<128x16xf32, #tpu.memory_space<vmem>>, %arg2: memref<1x16xf32, #tpu.memory_space<vmem>>, %arg3: memref<1x16xf32, #tpu.memory_space<vmem>>, %arg4: memref<128x8xf32, #tpu.memory_space<vmem>>) attributes {dimension_semantics = [#tpu.dimension_semantics<parallel>], iteration_bounds = array<i64: 4>, scalar_prefetch = 0 : i64, scratch_operands = 0 : i64, tpu.core_type = #tpu.core_type<tc>, window_params = [{transform_indices = @transform_0, window_bounds = array<i64: 128, 16>}, {pipeline_mode = #tpu.pipeline_mode<synchronous>, transform_indices = @transform_1, window_bounds = array<i64: 1, 16>}, {pipeline_mode = #tpu.pipeline_mode<synchronous>, transform_indices = @transform_2, window_bounds = array<i64: 1, 16>}, {transform_indices = @transform_3, window_bounds = array<i64: 128, 8>}]} {
    %c0 = arith.constant 0 : index
    %c0_0 = arith.constant 0 : index
    %0 = vector.load %arg1[%c0, %c0_0] : memref<128x16xf32, #tpu.memory_space<vmem>>, vector<128x16xf32>
    %c0_1 = arith.constant 0 : index
    %c0_2 = arith.constant 0 : index
    %1 = vector.load %arg2[%c0_1, %c0_2] : memref<1x16xf32, #tpu.memory_space<vmem>>, vector<1x16xf32>
    %2 = vector.broadcast %1 : vector<1x16xf32> to vector<128x16xf32>
    %3 = arith.mulf %0, %2 : vector<128x16xf32>
    %c0_3 = arith.constant 0 : index
    %c0_4 = arith.constant 0 : index
    %4 = vector.load %arg3[%c0_3, %c0_4] : memref<1x16xf32, #tpu.memory_space<vmem>>, vector<1x16xf32>
    %5 = vector.broadcast %4 : vector<1x16xf32> to vector<128x16xf32>
    %6 = arith.addf %3, %5 : vector<128x16xf32>
    %7 = vector.extract_strided_slice %6 {offsets = [0, 0], sizes = [128, 8], strides = [1, 1]} : vector<128x16xf32> to vector<128x8xf32>
    %8 = vector.extract_strided_slice %6 {offsets = [0, 8], sizes = [128, 8], strides = [1, 1]} : vector<128x16xf32> to vector<128x8xf32>
    %9 = arith.addf %7, %8 : vector<128x8xf32>
    %cst = arith.constant 0.000000e+00 : f32
    %10 = vector.broadcast %cst : f32 to vector<128x8xf32>
    %11 = arith.maximumf %9, %10 : vector<128x8xf32>
    %c0_5 = arith.constant 0 : index
    %c0_6 = arith.constant 0 : index
    %12 = vector.load %arg4[%c0_5, %c0_6] : memref<128x8xf32, #tpu.memory_space<vmem>>, vector<128x8xf32>
    tpu.vector_store %arg4[%c0_5, %c0_6], %11 {strides = array<i32>} : memref<128x8xf32, #tpu.memory_space<vmem>>, vector<128x8xf32>,
    return
  }
  func.func @transform_0(%arg0: i32) -> (i32, i32) {
    %c0_i32 = arith.constant 0 : i32
    %c0_i32_0 = arith.constant 0 : i32
    return %arg0, %c0_i32 : i32, i32
  }
  func.func @transform_1(%arg0: i32) -> (i32, i32) {
    %c0_i32 = arith.constant 0 : i32
    %c0_i32_0 = arith.constant 0 : i32
    %c0_i32_1 = arith.constant 0 : i32
    return %c0_i32, %c0_i32_0 : i32, i32
  }
  func.func @transform_2(%arg0: i32) -> (i32, i32) {
    %c0_i32 = arith.constant 0 : i32
    %c0_i32_0 = arith.constant 0 : i32
    %c0_i32_1 = arith.constant 0 : i32
    return %c0_i32, %c0_i32_0 : i32, i32
  }
  func.func @transform_3(%arg0: i32) -> (i32, i32) {
    %c0_i32 = arith.constant 0 : i32
    %c0_i32_0 = arith.constant 0 : i32
    return %arg0, %c0_i32 : i32, i32
  }
}

</mosaic_0001>

<bundles_post_ra>
// kernel: residual_block.5
= control target key start
LH: loop header
LB: loop body
LE: loop exit
PB: predicated region body
PF: predicated region fallthrough
CT: control target
= control target key end

     0   :  { %s374_s12 = smov 0   ;;  %s485_s0 = inlined_call_operand.vmem [shape: f32[512,8], index: 0, kind: input, shape index: {}]   ;;  %s486_s1 = inlined_call_operand.vmem [shape: f32[1,8], index: 1, kind: input, shape index: {}]   ;;  %s487_s2 = inlined_call_operand.vmem [shape: f32[1,8], index: 2, kind: input, shape index: {}]   ;;  %s488_s3 = inlined_call_operand.vmem [shape: f32[512,8], index: 3, kind: output, shape index: {}]  }
   0x1 LB: > { %s325_s13 = sadd.s32 4294967295, %s352_s12   ;;  %p329_p0 = scmp.ge.s32.totalorder %s352_s12, 1  ;;  %s352_s12 = sphi %s374_s12, %s13_s12  }
   0x2   : > { %p138_p1 = scmp.lt.s32.totalorder %s352_s12, 5 }
   0x4   : > { %p139_p2 = pnand %p329_p0, %p138_p1 }
   0x5   : > { %s330_s14 = sshll.u32 (!%p139_p2), %s325_s13, 4  ;;  %v385_v0 = vld [vmem:[%s486_s1] ss:$0 sm:$0xff] (!%p139_p2)  ;;  %vm252_vm0 = vcmask (!%p139_p2), 64512  }
   0x6   : > { %142 = sbr.rel (%p139_p2) target bundleno = 34 (0x22), region = 32  ;;  %p163_p3 = scmp.lt.s32.totalorder (!%p139_p2), %s330_s14, 63  ;;  %v395_v1 = vld [vmem:[%s487_s2] ss:$0 sm:$0xff] (!%p139_p2) }
   0xd   : > { %s490_s14 = smov (!%p163_p3, %s330_s14), 63 }
   0xe   : > { %s331_s15 = sshll.u32 %s490_s14, 3 }
   0xf   : > { %s390_s20 = scalar_lea.vmem %s485_s0, %s331_s15  ;;  %s418_s25 = scalar_lea.vmem %s488_s3, %s331_s15 }
  0x10   : > { %v174_v2 = vld [vmem:[%s390_s20] sm:$0xff]  ;;  %v175_v3 = vld [vmem:[%s390_s20 + $0x8] sm:$0xff]  ;;  %v176_v4 = vld [vmem:[%s390_s20 + $0x10] sm:$0xff] }
  0x11   : > { %v197_v5 = vmul.f32 %v385_v0, %v174_v2  ;;  %v198_v6 = vmul.f32 %v385_v0, %v175_v3  ;;  %v199_v7 = vmul.f32 %v385_v0, %v176_v4  ;;  %v177_v8 = vld [vmem:[%s390_s20 + $0x18] sm:$0xff]  ;;  %v178_v9 = vld [vmem:[%s390_s20 + $0x20] sm:$0xff]  ;;  %v179_v10 = vld [vmem:[%s390_s20 + $0x28] sm:$0xff] }
  0x12   : > { %v200_v11 = vmul.f32 %v385_v0, %v177_v8  ;;  %v201_v12 = vmul.f32 %v385_v0, %v178_v9  ;;  %v202_v13 = vmul.f32 %v385_v0, %v179_v10  ;;  %v180_v14 = vld [vmem:[%s390_s20 + $0x30] sm:$0xff]  ;;  %v181_v15 = vld [vmem:[%s390_s20 + $0x38] sm:$0xff]  ;;  %v182_v24 = vld [vmem:[%s390_s20 + $0x40] sm:$0xff] }
  0x13   : > { %v220_v16 = vadd.f32 %v395_v1, %v197_v5  ;;  %v221_v17 = vadd.f32 %v395_v1, %v198_v6  ;;  %v222_v18 = vadd.f32 %v395_v1, %v199_v7  ;;  %v203_v19 = vmul.f32 %v385_v0, %v180_v14  ;;  %v183_v25 = vld [vmem:[%s390_s20 + $0x48] sm:$0xff]  ;;  %v184_v26 = vld [vmem:[%s390_s20 + $0x50] sm:$0xff]  ;;  %v185_v31 = vld [vmem:[%s390_s20 + $0x58] sm:$0xff] }
  0x14   : > { %v223_v20 = vadd.f32 %v395_v1, %v200_v11  ;;  %v224_v21 = vadd.f32 %v395_v1, %v201_v12  ;;  %v225_v22 = vadd.f32 %v395_v1, %v202_v13  ;;  %v204_v23 = vmul.f32 %v385_v0, %v181_v15  ;;  %v186_v32 = vld [vmem:[%s390_s20 + $0x60] sm:$0xff]  ;;  %v187_v33 = vld [vmem:[%s390_s20 + $0x68] sm:$0xff]  ;;  %v188_v38 = vld [vmem:[%s390_s20 + $0x70] sm:$0xff] }
  0x15   : > { %v236_v27 = vmax.f32 %v220_v16, 0.0  ;;  %v237_v28 = vmax.f32 %v221_v17, 0.0  ;;  %v238_v29 = vmax.f32 %v222_v18, 0.0  ;;  %v226_v30 = vadd.f32 %v395_v1, %v203_v19  ;;  %v189_v43 = vld [vmem:[%s390_s20 + $0x78] sm:$0xff] }
  0x16   : > { %v239_v34 = vmax.f32 %v223_v20, 0.0  ;;  %v240_v35 = vmax.f32 %v224_v21, 0.0  ;;  %v241_v36 = vmax.f32 %v225_v22, 0.0  ;;  %v227_v37 = vadd.f32 %v395_v1, %v204_v23 }
  0x17   : > { %253 = vst.msk [vmem:[%s418_s25] sm:$0xff] %vm252_vm0, %v236_v27  ;;  %254 = vst.msk [vmem:[%s418_s25 + $0x8] sm:$0xff] %vm252_vm0, %v237_v28  ;;  %v242_v39 = vmax.f32 %v226_v30, 0.0  ;;  %v205_v40 = vmul.f32 %v385_v0, %v182_v24  ;;  %v206_v41 = vmul.f32 %v385_v0, %v183_v25  ;;  %v207_v42 = vmul.f32 %v385_v0, %v184_v26 }
  0x18   : > { %255 = vst.msk [vmem:[%s418_s25 + $0x10] sm:$0xff] %vm252_vm0, %v238_v29  ;;  %256 = vst.msk [vmem:[%s418_s25 + $0x18] sm:$0xff] %vm252_vm0, %v239_v34  ;;  %v243_v44 = vmax.f32 %v227_v37, 0.0  ;;  %v208_v45 = vmul.f32 %v385_v0, %v185_v31  ;;  %v209_v46 = vmul.f32 %v385_v0, %v186_v32  ;;  %v210_v47 = vmul.f32 %v385_v0, %v187_v33 }
  0x19   : > { %257 = vst.msk [vmem:[%s418_s25 + $0x20] sm:$0xff] %vm252_vm0, %v240_v35  ;;  %258 = vst.msk [vmem:[%s418_s25 + $0x28] sm:$0xff] %vm252_vm0, %v241_v36  ;;  %v228_v48 = vadd.f32 %v395_v1, %v205_v40  ;;  %v229_v49 = vadd.f32 %v395_v1, %v206_v41  ;;  %v230_v50 = vadd.f32 %v395_v1, %v207_v42 }
  0x1a   : > { %259 = vst.msk [vmem:[%s418_s25 + $0x30] sm:$0xff] %vm252_vm0, %v242_v39  ;;  %v211_v51 = vmul.f32 %v385_v0, %v188_v38  ;;  %260 = vst.msk [vmem:[%s418_s25 + $0x38] sm:$0xff] %vm252_vm0, %v243_v44  ;;  %v231_v52 = vadd.f32 %v395_v1, %v208_v45  ;;  %v232_v53 = vadd.f32 %v395_v1, %v209_v46 }
  0x1b   : > { %v233_v54 = vadd.f32 %v395_v1, %v210_v47  ;;  %v212_v55 = vmul.f32 %v385_v0, %v189_v43  ;;  %v244_v56 = vmax.f32 %v228_v48, 0.0  ;;  %v245_v57 = vmax.f32 %v229_v49, 0.0 }
  0x1c   : > { %v246_v58 = vmax.f32 %v230_v50, 0.0  ;;  %v234_v59 = vadd.f32 %v395_v1, %v211_v51  ;;  %v247_v60 = vmax.f32 %v231_v52, 0.0  ;;  %v248_v61 = vmax.f32 %v232_v53, 0.0 }
  0x1d   : > { %v249_v62 = vmax.f32 %v233_v54, 0.0  ;;  %v235_v63 = vadd.f32 %v395_v1, %v212_v55  ;;  %261 = vst.msk [vmem:[%s418_s25 + $0x40] sm:$0xff] %vm252_vm0, %v244_v56  ;;  %262 = vst.msk [vmem:[%s418_s25 + $0x48] sm:$0xff] %vm252_vm0, %v245_v57 }
  0x1e   : > { %263 = vst.msk [vmem:[%s418_s25 + $0x50] sm:$0xff] %vm252_vm0, %v246_v58  ;;  %v250_v2 = vmax.f32 %v234_v59, 0.0  ;;  %264 = vst.msk [vmem:[%s418_s25 + $0x58] sm:$0xff] %vm252_vm0, %v247_v60 }
  0x1f   : > { %265 = vst.msk [vmem:[%s418_s25 + $0x60] sm:$0xff] %vm252_vm0, %v248_v61  ;;  %266 = vst.msk [vmem:[%s418_s25 + $0x68] sm:$0xff] %vm252_vm0, %v249_v62  ;;  %v251_v0 = vmax.f32 %v235_v63, 0.0 }
  0x20   : > { %267 = vst.msk [vmem:[%s418_s25 + $0x70] sm:$0xff] %vm252_vm0, %v250_v2 }
  0x21   : > { %268 = vst.msk [vmem:[%s418_s25 + $0x78] sm:$0xff] %vm252_vm0, %v251_v0 }
  0x22 PF: > { %s13_s12 = sadd.s32 1, %s352_s12  }
  0x23   : > { %p10_p4 = scmp.ge.s32.totalorder %s13_s12, 6  }
  0x25   :  { %12 = sbr.rel (!%p10_p4) target bundleno = 1 (0x1), region = 62 }

// kernel: residual_block.4
= control target key start
LH: loop header
LB: loop body
LE: loop exit
PB: predicated region body
PF: predicated region fallthrough
CT: control target
= control target key end

     0   :  { %s704_s12 = smov 0   ;;  %s834_s0 = inlined_call_operand.vmem [shape: bf16[512,36], index: 0, kind: input, shape index: {}]   ;;  %s835_s1 = inlined_call_operand.vmem [shape: bf16[36,8], index: 1, kind: input, shape index: {}]   ;;  %s836_s2 = inlined_call_operand.vmem [shape: f32[512,8], index: 2, kind: output, shape index: {0}]   ;;  %s837_s3 = inlined_call_operand.vmem [shape: f32[4,2,8], index: 3, kind: output, shape index: {1}]  }
   0x1 LB: > { %s710_s13 = sadd.s32 4294967295, %s682_s12   ;;  %p589_p0 = scmp.ge.s32.totalorder %s682_s12, 1  ;;  %s682_s12 = sphi %s704_s12, %s14_s12  }
   0x2   : > { %p141_p1 = scmp.lt.s32.totalorder %s682_s12, 5 }
   0x4   : > { %p142_p2 = pnand %p589_p0, %p141_p1 }
   0x5   : > { %v665_v0 = vld [vmem:[%s835_s1] sm:$0xff] (!%p142_p2)   ;;  %v666_v1 = vld [vmem:[%s835_s1 + $0x8] sm:$0xff] (!%p142_p2)   ;;  %s590_s18 = sshll.u32 (!%p142_p2), %s710_s13, 4  ;;  %v667_v2 = vld [vmem:[%s835_s1 + $0x10] ss:$0 sps:$4 sm:$0x33] (!%p142_p2)  }
   0x6   : > { %145 = sbr.rel (%p142_p2) target bundleno = 279 (0x117), region = 28  ;;  %627 = vmatprep.subr.bf16.mxu0 (!%p142_p2), %v665_v0  ;;  %p170_p3 = scmp.lt.s32.totalorder (!%p142_p2), %s590_s18, 63  ;;  %649 = vmatprep.subr.bf16.mxu1 (!%p142_p2), %v665_v0  ;;  %vm287_vm0 = vcmask (!%p142_p2), 1041408   ;;  %vm262_vm1 = vcmask (!%p142_p2), 293888   ;;  %vm388_vm2 = vcmask (!%p142_p2), 64512   ;;  %vm442_vm3 = vcmask (!%p142_p2), 57344  }
   0x7   : > { %628 = vmatpush3.bf16.msra.mxu0 (!%p142_p2), %v665_v0  ;;  %652 = vmatpush3.bf16.msra.mxu1 (!%p142_p2), %v665_v0  ;;  %v289_v3 = vsel (!%p142_p2), %vm287_vm0, %v667_v2, 0  ;;  %p181_p4 = scmp.lt.s32.totalorder (!%p142_p2), %s710_s13, 3 }
   0x8   : > { %629 = vmatprep.subr.bf16.mxu0 (!%p142_p2), %v666_v1  ;;  %650 = vmatprep.subr.bf16.mxu1 (!%p142_p2), %v666_v1 }
   0xb   : > { %630 = vmatpush3.bf16.msra.mxu0 (!%p142_p2), %v666_v1  ;;  %653 = vmatpush3.bf16.msra.mxu1 (!%p142_p2), %v666_v1 }
   0xc   : > { %655 = vmatprep.subr.msk.bf16.mxu0 (!%p142_p2), %vm287_vm0, %v667_v2  ;;  %656 = vmatprep.subr.msk.bf16.mxu1 (!%p142_p2), %vm287_vm0, %v667_v2 }
   0xd   : > { %s839_s18 = smov (!%p170_p3, %s590_s18), 63  ;;  %s841_s13 = smov (!%p181_p4, %s710_s13), 3 }
   0xe   : > { %s591_s21 = sshll.u32 %s839_s18, 2  ;;  %s593_s25 = sshll.u32 %s839_s18, 3 }
   0xf   : > { %s173_s24 = scalar_lea.vmem %s834_s0, %s591_s21  ;;  %632 = vmatpush3.bf16.msra.mxu0 %v289_v3  ;;  %654 = vmatpush3.bf16.msra.mxu1 %v289_v3  ;;  %s742_s28 = scalar_lea.vmem %s836_s2, %s593_s25 }
  0x10   : > { %v668_v4 = vld [vmem:[%s173_s24] sm:$0xff]   ;;  %v669_v5 = vld [vmem:[%s173_s24 + $0x8] sm:$0xff]   ;;  %v670_v6 = vld [vmem:[%s173_s24 + $0x10] sm:$0xff]   ;;  %s594_s29 = sshll.u32 %s841_s13, 1 }
  0x11   : > { %633 = vmatprep.mubr.msk.bf16.mxu0 %vm262_vm1, %v668_v4  ;;  %v672_v7 = vld [vmem:[%s173_s24 + $0x20] sm:$0xff]   ;;  %v673_v8 = vld [vmem:[%s173_s24 + $0x28] sm:$0xff]   ;;  %v674_v9 = vld [vmem:[%s173_s24 + $0x30] sm:$0xff]   ;;  %s184_s5 = scalar_lea.vmem %s837_s3, %s594_s29 }
  0x12   : > { %634 = vmatmul.mubr.msk.bf16.vlgmr.msra.gmra.mrb[0].mxu0 %vm262_vm1, %v669_v5  ;;  %641 = vmatprep.mubr.msk.bf16.mxu1 %vm262_vm1, %v672_v7  ;;  %v671_v10 = vld [vmem:[%s173_s24 + $0x18] sm:$0xff]  }
  0x13   : > { %637 = vmatprep.mubr.msk.bf16.mxu0 %vm262_vm1, %v670_v6  ;;  %642 = vmatmul.mubr.msk.bf16.vlgmr.msra.gmra.mrb[0].mxu1 %vm262_vm1, %v673_v8  ;;  %v675_v11 = vld [vmem:[%s173_s24 + $0x38] sm:$0xff]  }
  0x14   : > { %645 = vmatprep.mubr.msk.bf16.mxu1 %vm262_vm1, %v674_v9 }
  0x1a   : > { %638 = vmatmul.mubr.msk.bf16.gmra.mrb[4].mxu0 %vm262_vm1, %v671_v10 }
  0x1b   : > { %646 = vmatmul.mubr.msk.bf16.gmra.mrb[4].mxu1 %vm262_vm1, %v675_v11 }
  0xe5   : > { %v635_v12 = vpop.f32.mrb[0].mxu0 }
  0xe6   : > { %391 = vst.msk [vmem:[%s742_s28 + $0x10] sm:$0xff] %vm388_vm2, %v635_v12  ;;  %v325_v13 = vpop.f32.mrb[1].mxu0  ;;  %v746_v14 = vpop.f32.mrb[0].mxu1  ;;  %v446_v20 = vmul.f32 %v635_v12, %v635_v12  ;;  %v408_v26 = vsel %vm388_vm2, %v635_v12, 0.0 }
  0xe7   : > { %389 = vst.msk [vmem:[%s742_s28] sm:$0xff] %vm388_vm2, %v325_v13  ;;  %v444_v15 = vmul.f32 %v325_v13, %v325_v13  ;;  %v636_v16 = vpop.f32.mrb[2].mxu0  ;;  %399 = vst.msk [vmem:[%s742_s28 + $0x50] sm:$0xff] %vm388_vm2, %v746_v14  ;;  %v357_v17 = vpop.f32.mrb[1].mxu1  ;;  %v405_v21 = vsel %vm388_vm2, %v325_v13, 0.0  ;;  %v454_v7 = vmul.f32 %v746_v14, %v746_v14  ;;  %v424_v11 = vsel %vm388_vm2, %v746_v14, 0.0 }
  0xe8   : > { %392 = vst.msk [vmem:[%s742_s28 + $0x18] sm:$0xff] %vm388_vm2, %v636_v16  ;;  %v328_v18 = vpop.f32.mrb[3].mxu0  ;;  %397 = vst.msk [vmem:[%s742_s28 + $0x40] sm:$0xff] %vm388_vm2, %v357_v17  ;;  %v757_v19 = vpop.f32.mrb[2].mxu1  ;;  %v447_v28 = vmul.f32 %v636_v16, %v636_v16  ;;  %v463_v32 = vsel %vm388_vm2, %v446_v20, 0.0  ;;  %v410_v33 = vsel %vm388_vm2, %v636_v16, 0.0  ;;  %v452_v58 = vmul.f32 %v357_v17, %v357_v17 }
  0xe9   : > { %390 = vst.msk [vmem:[%s742_s28 + $0x8] sm:$0xff] %vm388_vm2, %v328_v18  ;;  %v406_v22 = vsel %vm388_vm2, %v328_v18, 0.0  ;;  %v445_v23 = vmul.f32 %v328_v18, %v328_v18  ;;  %400 = vst.msk [vmem:[%s742_s28 + $0x58] sm:$0xff] %vm388_vm2, %v757_v19  ;;  %v360_v24 = vpop.f32.mrb[3].mxu1  ;;  %v460_v27 = vsel %vm388_vm2, %v444_v15, 0.0  ;;  %v420_v63 = vsel %vm388_vm2, %v357_v17, 0.0 }
  0xea   : > { %v407_v25 = vadd.f32 %v406_v22, %v405_v21  ;;  %398 = vst.msk [vmem:[%s742_s28 + $0x48] sm:$0xff] %vm388_vm2, %v360_v24  ;;  %v465_v39 = vsel %vm388_vm2, %v447_v28, 0.0  ;;  %v475_v3 = vsel %vm388_vm2, %v452_v58, 0.0  ;;  %v453_v4 = vmul.f32 %v360_v24, %v360_v24 }
  0xeb   : > { %v461_v29 = vsel %vm388_vm2, %v445_v23, 0.0  ;;  %v422_v8 = vsel %vm388_vm2, %v360_v24, 0.0  ;;  %v455_v12 = vmul.f32 %v757_v19, %v757_v19  ;;  %v479_v18 = vsel %vm388_vm2, %v454_v7, 0.0 }
  0xec   : > { %v409_v30 = vadd.f32 %v408_v26, %v407_v25  ;;  %v462_v31 = vadd.f32 %v461_v29, %v460_v27  ;;  %v477_v13 = vsel %vm388_vm2, %v453_v4, 0.0  ;;  %v426_v20 = vsel %vm388_vm2, %v757_v19, 0.0 }
  0xed   : > { %v639_v34 = vpop.f32.mrb[4].mxu0  ;;  %v481_v24 = vsel %vm388_vm2, %v455_v12, 0.0 }
  0xee   : > { %v464_v35 = vadd.f32 %v463_v32, %v462_v31  ;;  %395 = vst.msk [vmem:[%s742_s28 + $0x30] sm:$0xff] %vm388_vm2, %v639_v34  ;;  %v341_v36 = vpop.f32.mrb[5].mxu0  ;;  %v411_v37 = vadd.f32 %v410_v33, %v409_v30  ;;  %v775_v38 = vpop.f32.mrb[4].mxu1  ;;  %v450_v48 = vmul.f32 %v639_v34, %v639_v34  ;;  %v416_v55 = vsel %vm388_vm2, %v639_v34, 0.0 }
  0xef   : > { %393 = vst.msk [vmem:[%s742_s28 + $0x20] sm:$0xff] %vm388_vm2, %v341_v36  ;;  %v412_v40 = vsel %vm388_vm2, %v341_v36, 0.0  ;;  %v448_v41 = vmul.f32 %v341_v36, %v341_v36  ;;  %v640_v42 = vpop.f32.mrb[6].mxu0  ;;  %403 = vst.msk [vmem:[%s742_s28 + $0x70] sm:$0xff] %vm388_vm2, %v775_v38  ;;  %v373_v43 = vpop.f32.mrb[5].mxu1  ;;  %v458_v28 = vmul.f32 %v775_v38, %v775_v38  ;;  %v432_v31 = vsel %vm388_vm2, %v775_v38, 0.0 }
  0xf0   : > { %v413_v44 = vadd.f32 %v412_v40, %v411_v37  ;;  %v466_v45 = vadd.f32 %v465_v39, %v464_v35  ;;  %396 = vst.msk [vmem:[%s742_s28 + $0x38] sm:$0xff] %vm388_vm2, %v640_v42  ;;  %v344_v46 = vpop.f32.mrb[7].mxu0  ;;  %401 = vst.msk [vmem:[%s742_s28 + $0x60] sm:$0xff] %vm388_vm2, %v373_v43  ;;  %v648_v47 = vpop.f32.mrb[6].mxu1  ;;  %v451_v56 = vmul.f32 %v640_v42, %v640_v42  ;;  %v471_v61 = vsel %vm388_vm2, %v450_v48, 0.0 }
  0xf1   : > { %v467_v49 = vsel %vm388_vm2, %v448_v41, 0.0  ;;  %394 = vst.msk [vmem:[%s742_s28 + $0x28] sm:$0xff] %vm388_vm2, %v344_v46  ;;  %v414_v50 = vsel %vm388_vm2, %v344_v46, 0.0  ;;  %v449_v51 = vmul.f32 %v344_v46, %v344_v46  ;;  %404 = vst.msk [vmem:[%s742_s28 + $0x78] sm:$0xff] %vm388_vm2, %v648_v47  ;;  %v376_v52 = vpop.f32.mrb[7].mxu1  ;;  %v418_v62 = vsel %vm388_vm2, %v640_v42, 0.0 }
  0xf2   : > { %v468_v53 = vadd.f32 %v467_v49, %v466_v45  ;;  %v415_v54 = vadd.f32 %v414_v50, %v413_v44  ;;  %402 = vst.msk [vmem:[%s742_s28 + $0x68] sm:$0xff] %vm388_vm2, %v376_v52  ;;  %v473_v2 = vsel %vm388_vm2, %v451_v56, 0.0  ;;  %v456_v15 = vmul.f32 %v373_v43, %v373_v43 }
  0xf3   : > { %v469_v57 = vsel %vm388_vm2, %v449_v51, 0.0  ;;  %v428_v21 = vsel %vm388_vm2, %v373_v43, 0.0  ;;  %v457_v25 = vmul.f32 %v376_v52, %v376_v52  ;;  %v430_v29 = vsel %vm388_vm2, %v376_v52, 0.0 }
  0xf4   : > { %v417_v59 = vadd.f32 %v416_v55, %v415_v54  ;;  %v470_v60 = vadd.f32 %v469_v57, %v468_v53  ;;  %v483_v14 = vsel %vm388_vm2, %v456_v15, 0.0  ;;  %v459_v32 = vmul.f32 %v648_v47, %v648_v47 }
  0xf5   : > { %v485_v33 = vsel %vm388_vm2, %v457_v25, 0.0  ;;  %v487_v36 = vsel %vm388_vm2, %v458_v28, 0.0  ;;  %v434_v37 = vsel %vm388_vm2, %v648_v47, 0.0 }
  0xf6   : > { %v472_v0 = vadd.f32 %v471_v61, %v470_v60  ;;  %v419_v1 = vadd.f32 %v418_v62, %v417_v59  ;;  %v489_v41 = vsel %vm388_vm2, %v459_v32, 0.0 }
  0xf8   : > { %v421_v5 = vadd.f32 %v420_v63, %v419_v1  ;;  %v474_v6 = vadd.f32 %v473_v2, %v472_v0 }
  0xfa   : > { %v476_v9 = vadd.f32 %v475_v3, %v474_v6  ;;  %v423_v10 = vadd.f32 %v422_v8, %v421_v5 }
  0xfc   : > { %v425_v16 = vadd.f32 %v424_v11, %v423_v10  ;;  %v478_v17 = vadd.f32 %v477_v13, %v476_v9 }
  0xfe   : > { %v480_v22 = vadd.f32 %v479_v18, %v478_v17  ;;  %v427_v23 = vadd.f32 %v426_v20, %v425_v16 }
 0x100   : > { %v429_v26 = vadd.f32 %v428_v21, %v427_v23  ;;  %v482_v27 = vadd.f32 %v481_v24, %v480_v22 }
 0x102   : > { %v484_v30 = vadd.f32 %v483_v14, %v482_v27  ;;  %v431_v19 = vadd.f32 %v430_v29, %v429_v26 }
 0x104   : > { %v433_v34 = vadd.f32 %v432_v31, %v431_v19  ;;  %v486_v35 = vadd.f32 %v485_v33, %v484_v30 }
 0x106   : > { %v435_v39 = vadd.f32 %v434_v37, %v433_v34  ;;  %v488_v40 = vadd.f32 %v487_v36, %v486_v35 }
 0x108   : > { %v436_v42 = vrot.slane %v435_v39, 4  ;;  %v490_v43 = vadd.f32 %v489_v41, %v488_v40 }
 0x10a   : > { %v437_v44 = vadd.f32 %v436_v42, %v435_v39  ;;  %v491_v45 = vrot.slane %v490_v43, 4 }
 0x10c   : > { %v438_v38 = vrot.slane %v437_v44, 2  ;;  %v492_v46 = vadd.f32 %v491_v45, %v490_v43 }
 0x10e   : > { %v439_v48 = vadd.f32 %v438_v38, %v437_v44  ;;  %v493_v49 = vrot.slane %v492_v46, 2 }
 0x110   : > { %v440_v50 = vrot.slane %v439_v48, 1  ;;  %v494_v51 = vadd.f32 %v493_v49, %v492_v46 }
 0x112   : > { %v441_v47 = vadd.f32 %v440_v50, %v439_v48  ;;  %v495_v52 = vrot.slane %v494_v51, 1 }
 0x114   : > { %443 = vst.msk [vmem:[%s184_s5] sm:$0x1] %vm442_vm3, %v441_v47  ;;  %v496_v53 = vadd.f32 %v495_v52, %v494_v51 }
 0x116   : > { %497 = vst.msk [vmem:[%s184_s5 + $0x1] sm:$0x1] %vm442_vm3, %v496_v53 }
 0x117 PF: > { %s14_s12 = sadd.s32 1, %s682_s12  }
 0x118   : > { %p11_p5 = scmp.ge.s32.totalorder %s14_s12, 6  }
 0x11a   :  { %13 = sbr.rel (!%p11_p5) target bundleno = 1 (0x1), region = 70 }

// kernel: residual_block.6
= control target key start
LH: loop header
LB: loop body
LE: loop exit
PB: predicated region body
PF: predicated region fallthrough
CT: control target
= control target key end

     0   :  { %s737_s12 = smov 0   ;;  %s873_s0 = inlined_call_operand.vmem [shape: bf16[512,76], index: 0, kind: input, shape index: {}]   ;;  %s874_s1 = inlined_call_operand.vmem [shape: bf16[76,16], index: 1, kind: input, shape index: {}]   ;;  %s875_s2 = inlined_call_operand.vmem [shape: f32[512,16], index: 2, kind: output, shape index: {0}]   ;;  %s876_s3 = inlined_call_operand.vmem [shape: f32[4,2,16], index: 3, kind: output, shape index: {1}]  }
   0x1 LB: > { %s743_s13 = sadd.s32 4294967295, %s715_s12   ;;  %p608_p0 = scmp.ge.s32.totalorder %s715_s12, 1  ;;  %s715_s12 = sphi %s737_s12, %s14_s12  }
   0x2   : > { %p141_p1 = scmp.lt.s32.totalorder %s715_s12, 5 }
   0x4   : > { %p142_p2 = pnand %p608_p0, %p141_p1 }
   0x5   : > { %v696_v0 = vld [vmem:[%s874_s1] sm:$0xff] (!%p142_p2)   ;;  %v697_v1 = vld [vmem:[%s874_s1 + $0x8] sm:$0xff] (!%p142_p2)   ;;  %s609_s18 = sshll.u32 (!%p142_p2), %s743_s13, 4  ;;  %v698_v2 = vld [vmem:[%s874_s1 + $0x10] sm:$0xff] (!%p142_p2)   ;;  %vm281_vm0 = vcmask (!%p142_p2), 621568   ;;  %vm306_vm1 = vcmask (!%p142_p2), 1045504  }
   0x6   : > { %145 = sbr.rel (%p142_p2) target bundleno = 287 (0x11f), region = 28  ;;  %650 = vmatprep.subr.bf16.mxu0 (!%p142_p2), %v696_v0  ;;  %676 = vmatprep.subr.bf16.mxu1 (!%p142_p2), %v696_v0  ;;  %p170_p3 = scmp.lt.s32.totalorder (!%p142_p2), %s609_s18, 63  ;;  %v699_v3 = vld [vmem:[%s874_s1 + $0x18] sm:$0xff] (!%p142_p2)   ;;  %v700_v5 = vld [vmem:[%s874_s1 + $0x20] sm:$0x3f] (!%p142_p2)   ;;  %vm407_vm2 = vcmask (!%p142_p2), 130048  }
   0x7   : > { %651 = vmatpush3.bf16.msra.mxu0 (!%p142_p2), %v696_v0  ;;  %681 = vmatpush3.bf16.msra.mxu1 (!%p142_p2), %v696_v0  ;;  %v308_v7 = vsel (!%p142_p2), %vm306_vm1, %v700_v5, 0  ;;  %p181_p4 = scmp.lt.s32.totalorder (!%p142_p2), %s743_s13, 3  ;;  %vm461_vm3 = vcmask (!%p142_p2), 122880  }
   0x8   : > { %652 = vmatprep.subr.bf16.mxu0 (!%p142_p2), %v697_v1  ;;  %677 = vmatprep.subr.bf16.mxu1 (!%p142_p2), %v697_v1 }
   0xb   : > { %653 = vmatpush3.bf16.msra.mxu0 (!%p142_p2), %v697_v1  ;;  %682 = vmatpush3.bf16.msra.mxu1 (!%p142_p2), %v697_v1 }
   0xc   : > { %654 = vmatprep.subr.bf16.mxu0 (!%p142_p2), %v698_v2  ;;  %678 = vmatprep.subr.bf16.mxu1 (!%p142_p2), %v698_v2 }
   0xd   : > { %s878_s18 = smov (!%p170_p3, %s609_s18), 63  ;;  %s880_s13 = smov (!%p181_p4, %s743_s13), 3 }
   0xe   : > { %s610_s21 = sshll.u32 %s878_s18, 2  ;;  %s612_s29 = sshll.u32 %s878_s18, 3 }
   0xf   : > { %s173_s26 = scalar_lea.vmem %s873_s0, %s610_s21  ;;  %655 = vmatpush3.bf16.msra.mxu0 %v698_v2  ;;  %683 = vmatpush3.bf16.msra.mxu1 %v698_v2  ;;  %s781_s5 = scalar_lea.vmem %s875_s2, %s612_s29 }
  0x10   : > { %v701_v4 = vld [vmem:[%s173_s26] sm:$0xff]   ;;  %656 = vmatprep.subr.bf16.mxu0 %v699_v3  ;;  %679 = vmatprep.subr.bf16.mxu1 %v699_v3  ;;  %v702_v8 = vld [vmem:[%s173_s26 + $0x8] sm:$0xff]   ;;  %v703_v9 = vld [vmem:[%s173_s26 + $0x10] sm:$0xff]   ;;  %s613_s6 = sshll.u32 %s880_s13, 1 }
  0x11   : > { %660 = vmatprep.mubr.msk.bf16.mxu0 %vm281_vm0, %v701_v4  ;;  %v705_v6 = vld [vmem:[%s173_s26 + $0x20] sm:$0xff]   ;;  %v706_v10 = vld [vmem:[%s173_s26 + $0x28] sm:$0xff]   ;;  %v707_v11 = vld [vmem:[%s173_s26 + $0x30] sm:$0xff]   ;;  %s184_s9 = scalar_lea.vmem %s876_s3, %s613_s6 }
  0x12   : > { %668 = vmatprep.mubr.msk.bf16.mxu1 %vm281_vm0, %v705_v6  ;;  %v704_v12 = vld [vmem:[%s173_s26 + $0x18] sm:$0xff]  }
  0x13   : > { %657 = vmatpush3.bf16.msra.mxu0 %v699_v3  ;;  %684 = vmatpush3.bf16.msra.mxu1 %v699_v3  ;;  %v708_v13 = vld [vmem:[%s173_s26 + $0x38] sm:$0xff]  }
  0x14   : > { %686 = vmatprep.subr.msk.bf16.mxu0 %vm306_vm1, %v700_v5  ;;  %687 = vmatprep.subr.msk.bf16.mxu1 %vm306_vm1, %v700_v5 }
  0x17   : > { %659 = vmatpush3.bf16.msra.mxu0 %v308_v7  ;;  %685 = vmatpush3.bf16.msra.mxu1 %v308_v7 }
  0x1a   : > { %661 = vmatmul.mubr.msk.bf16.vlgmr.msra.gmra.mrb[0].mxu0 %vm281_vm0, %v702_v8  ;;  %669 = vmatmul.mubr.msk.bf16.vlgmr.msra.gmra.mrb[0].mxu1 %vm281_vm0, %v706_v10 }
  0x1b   : > { %664 = vmatprep.mubr.msk.bf16.mxu0 %vm281_vm0, %v703_v9  ;;  %672 = vmatprep.mubr.msk.bf16.mxu1 %vm281_vm0, %v707_v11 }
  0x22   : > { %665 = vmatmul.mubr.msk.bf16.gmra.mrb[4].mxu0 %vm281_vm0, %v704_v12  ;;  %673 = vmatmul.mubr.msk.bf16.gmra.mrb[4].mxu1 %vm281_vm0, %v708_v13 }
  0xed   : > { %v662_v14 = vpop.f32.mrb[0].mxu0  ;;  %v785_v16 = vpop.f32.mrb[0].mxu1 }
  0xee   : > { %410 = vst.msk [vmem:[%s781_s5 + $0x10] sm:$0xff] %vm407_vm2, %v662_v14  ;;  %v344_v15 = vpop.f32.mrb[1].mxu0  ;;  %418 = vst.msk [vmem:[%s781_s5 + $0x50] sm:$0xff] %vm407_vm2, %v785_v16  ;;  %v376_v19 = vpop.f32.mrb[1].mxu1  ;;  %v465_v22 = vmul.f32 %v662_v14, %v662_v14  ;;  %v427_v28 = vsel %vm407_vm2, %v662_v14, 0.0  ;;  %v473_v9 = vmul.f32 %v785_v16, %v785_v16  ;;  %v443_v13 = vsel %vm407_vm2, %v785_v16, 0.0 }
  0xef   : > { %408 = vst.msk [vmem:[%s781_s5] sm:$0xff] %vm407_vm2, %v344_v15  ;;  %v463_v17 = vmul.f32 %v344_v15, %v344_v15  ;;  %v663_v18 = vpop.f32.mrb[2].mxu0  ;;  %416 = vst.msk [vmem:[%s781_s5 + $0x40] sm:$0xff] %vm407_vm2, %v376_v19  ;;  %v796_v21 = vpop.f32.mrb[2].mxu1  ;;  %v424_v23 = vsel %vm407_vm2, %v344_v15, 0.0  ;;  %v471_v60 = vmul.f32 %v376_v19, %v376_v19  ;;  %v439_v1 = vsel %vm407_vm2, %v376_v19, 0.0 }
  0xf0   : > { %411 = vst.msk [vmem:[%s781_s5 + $0x18] sm:$0xff] %vm407_vm2, %v663_v18  ;;  %v347_v20 = vpop.f32.mrb[3].mxu0  ;;  %419 = vst.msk [vmem:[%s781_s5 + $0x58] sm:$0xff] %vm407_vm2, %v796_v21  ;;  %v379_v26 = vpop.f32.mrb[3].mxu1  ;;  %v466_v30 = vmul.f32 %v663_v18, %v663_v18  ;;  %v482_v34 = vsel %vm407_vm2, %v465_v22, 0.0  ;;  %v429_v35 = vsel %vm407_vm2, %v663_v18, 0.0  ;;  %v474_v14 = vmul.f32 %v796_v21, %v796_v21 }
  0xf1   : > { %409 = vst.msk [vmem:[%s781_s5 + $0x8] sm:$0xff] %vm407_vm2, %v347_v20  ;;  %v425_v24 = vsel %vm407_vm2, %v347_v20, 0.0  ;;  %v464_v25 = vmul.f32 %v347_v20, %v347_v20  ;;  %417 = vst.msk [vmem:[%s781_s5 + $0x48] sm:$0xff] %vm407_vm2, %v379_v26  ;;  %v479_v29 = vsel %vm407_vm2, %v463_v17, 0.0  ;;  %v494_v5 = vsel %vm407_vm2, %v471_v60, 0.0 }
  0xf2   : > { %v426_v27 = vadd.f32 %v425_v24, %v424_v23  ;;  %v484_v41 = vsel %vm407_vm2, %v466_v30, 0.0  ;;  %v472_v6 = vmul.f32 %v379_v26, %v379_v26  ;;  %v441_v10 = vsel %vm407_vm2, %v379_v26, 0.0 }
  0xf3   : > { %v480_v31 = vsel %vm407_vm2, %v464_v25, 0.0  ;;  %v498_v20 = vsel %vm407_vm2, %v473_v9, 0.0  ;;  %v445_v22 = vsel %vm407_vm2, %v796_v21, 0.0  ;;  %v500_v26 = vsel %vm407_vm2, %v474_v14, 0.0 }
  0xf4   : > { %v428_v32 = vadd.f32 %v427_v28, %v426_v27  ;;  %v481_v33 = vadd.f32 %v480_v31, %v479_v29  ;;  %v496_v15 = vsel %vm407_vm2, %v472_v6, 0.0 }
  0xf5   : > { %v666_v36 = vpop.f32.mrb[4].mxu0  ;;  %v814_v40 = vpop.f32.mrb[4].mxu1 }
  0xf6   : > { %v483_v37 = vadd.f32 %v482_v34, %v481_v33  ;;  %414 = vst.msk [vmem:[%s781_s5 + $0x30] sm:$0xff] %vm407_vm2, %v666_v36  ;;  %v360_v38 = vpop.f32.mrb[5].mxu0  ;;  %v430_v39 = vadd.f32 %v429_v35, %v428_v32  ;;  %422 = vst.msk [vmem:[%s781_s5 + $0x70] sm:$0xff] %vm407_vm2, %v814_v40  ;;  %v392_v45 = vpop.f32.mrb[5].mxu1  ;;  %v469_v50 = vmul.f32 %v666_v36, %v666_v36  ;;  %v435_v57 = vsel %vm407_vm2, %v666_v36, 0.0 }
  0xf7   : > { %412 = vst.msk [vmem:[%s781_s5 + $0x20] sm:$0xff] %vm407_vm2, %v360_v38  ;;  %v431_v42 = vsel %vm407_vm2, %v360_v38, 0.0  ;;  %v467_v43 = vmul.f32 %v360_v38, %v360_v38  ;;  %v667_v44 = vpop.f32.mrb[6].mxu0  ;;  %420 = vst.msk [vmem:[%s781_s5 + $0x60] sm:$0xff] %vm407_vm2, %v392_v45  ;;  %v675_v49 = vpop.f32.mrb[6].mxu1  ;;  %v475_v17 = vmul.f32 %v392_v45, %v392_v45  ;;  %v447_v23 = vsel %vm407_vm2, %v392_v45, 0.0 }
  0xf8   : > { %v432_v46 = vadd.f32 %v431_v42, %v430_v39  ;;  %v485_v47 = vadd.f32 %v484_v41, %v483_v37  ;;  %415 = vst.msk [vmem:[%s781_s5 + $0x38] sm:$0xff] %vm407_vm2, %v667_v44  ;;  %v363_v48 = vpop.f32.mrb[7].mxu0  ;;  %423 = vst.msk [vmem:[%s781_s5 + $0x78] sm:$0xff] %vm407_vm2, %v675_v49  ;;  %v395_v54 = vpop.f32.mrb[7].mxu1  ;;  %v470_v58 = vmul.f32 %v667_v44, %v667_v44  ;;  %v490_v63 = vsel %vm407_vm2, %v469_v50, 0.0 }
  0xf9   : > { %v486_v51 = vsel %vm407_vm2, %v467_v43, 0.0  ;;  %413 = vst.msk [vmem:[%s781_s5 + $0x28] sm:$0xff] %vm407_vm2, %v363_v48  ;;  %v433_v52 = vsel %vm407_vm2, %v363_v48, 0.0  ;;  %v468_v53 = vmul.f32 %v363_v48, %v363_v48  ;;  %421 = vst.msk [vmem:[%s781_s5 + $0x68] sm:$0xff] %vm407_vm2, %v395_v54  ;;  %v437_v0 = vsel %vm407_vm2, %v667_v44, 0.0 }
  0xfa   : > { %v487_v55 = vadd.f32 %v486_v51, %v485_v47  ;;  %v434_v56 = vadd.f32 %v433_v52, %v432_v46  ;;  %v492_v4 = vsel %vm407_vm2, %v470_v58, 0.0  ;;  %v502_v16 = vsel %vm407_vm2, %v475_v17, 0.0 }
  0xfb   : > { %v488_v59 = vsel %vm407_vm2, %v468_v53, 0.0  ;;  %v476_v27 = vmul.f32 %v395_v54, %v395_v54  ;;  %v477_v30 = vmul.f32 %v814_v40, %v814_v40  ;;  %v449_v31 = vsel %vm407_vm2, %v395_v54, 0.0 }
  0xfc   : > { %v436_v61 = vadd.f32 %v435_v57, %v434_v56  ;;  %v489_v62 = vadd.f32 %v488_v59, %v487_v55  ;;  %v451_v33 = vsel %vm407_vm2, %v814_v40, 0.0  ;;  %v478_v34 = vmul.f32 %v675_v49, %v675_v49 }
  0xfd   : > { %v504_v35 = vsel %vm407_vm2, %v476_v27, 0.0  ;;  %v506_v38 = vsel %vm407_vm2, %v477_v30, 0.0  ;;  %v453_v39 = vsel %vm407_vm2, %v675_v49, 0.0 }
  0xfe   : > { %v491_v2 = vadd.f32 %v490_v63, %v489_v62  ;;  %v438_v3 = vadd.f32 %v437_v0, %v436_v61  ;;  %v508_v43 = vsel %vm407_vm2, %v478_v34, 0.0 }
 0x100   : > { %v440_v7 = vadd.f32 %v439_v1, %v438_v3  ;;  %v493_v8 = vadd.f32 %v492_v4, %v491_v2 }
 0x102   : > { %v495_v11 = vadd.f32 %v494_v5, %v493_v8  ;;  %v442_v12 = vadd.f32 %v441_v10, %v440_v7 }
 0x104   : > { %v444_v18 = vadd.f32 %v443_v13, %v442_v12  ;;  %v497_v19 = vadd.f32 %v496_v15, %v495_v11 }
 0x106   : > { %v499_v24 = vadd.f32 %v498_v20, %v497_v19  ;;  %v446_v25 = vadd.f32 %v445_v22, %v444_v18 }
 0x108   : > { %v448_v28 = vadd.f32 %v447_v23, %v446_v25  ;;  %v501_v29 = vadd.f32 %v500_v26, %v499_v24 }
 0x10a   : > { %v503_v32 = vadd.f32 %v502_v16, %v501_v29  ;;  %v450_v21 = vadd.f32 %v449_v31, %v448_v28 }
 0x10c   : > { %v452_v36 = vadd.f32 %v451_v33, %v450_v21  ;;  %v505_v37 = vadd.f32 %v504_v35, %v503_v32 }
 0x10e   : > { %v454_v41 = vadd.f32 %v453_v39, %v452_v36  ;;  %v507_v42 = vadd.f32 %v506_v38, %v505_v37 }
 0x110   : > { %v455_v44 = vrot.slane %v454_v41, 4  ;;  %v509_v45 = vadd.f32 %v508_v43, %v507_v42 }
 0x112   : > { %v456_v46 = vadd.f32 %v455_v44, %v454_v41  ;;  %v510_v47 = vrot.slane %v509_v45, 4 }
 0x114   : > { %v457_v40 = vrot.slane %v456_v46, 2  ;;  %v511_v48 = vadd.f32 %v510_v47, %v509_v45 }
 0x116   : > { %v458_v50 = vadd.f32 %v457_v40, %v456_v46  ;;  %v512_v51 = vrot.slane %v511_v48, 2 }
 0x118   : > { %v459_v52 = vrot.slane %v458_v50, 1  ;;  %v513_v53 = vadd.f32 %v512_v51, %v511_v48 }
 0x11a   : > { %v460_v49 = vadd.f32 %v459_v52, %v458_v50  ;;  %v514_v54 = vrot.slane %v513_v53, 1 }
 0x11c   : > { %462 = vst.msk [vmem:[%s184_s9] sm:$0x1] %vm461_vm3, %v460_v49  ;;  %v515_v55 = vadd.f32 %v514_v54, %v513_v53 }
 0x11e   : > { %516 = vst.msk [vmem:[%s184_s9 + $0x1] sm:$0x1] %vm461_vm3, %v515_v55 }
 0x11f PF: > { %s14_s12 = sadd.s32 1, %s715_s12  }
 0x120   : > { %p11_p5 = scmp.ge.s32.totalorder %s14_s12, 6  }
 0x122   :  { %13 = sbr.rel (!%p11_p5) target bundleno = 1 (0x1), region = 70 }

// kernel: residual_block.7
= control target key start
LH: loop header
LB: loop body
LE: loop exit
PB: predicated region body
PF: predicated region fallthrough
CT: control target
= control target key end

     0   :  { %s456_s12 = smov 0   ;;  %s584_s0 = inlined_call_operand.vmem [shape: f32[512,16], index: 0, kind: input, shape index: {}]   ;;  %s585_s1 = inlined_call_operand.vmem [shape: f32[1,16], index: 1, kind: input, shape index: {}]   ;;  %s586_s2 = inlined_call_operand.vmem [shape: f32[1,16], index: 2, kind: input, shape index: {}]   ;;  %s587_s3 = inlined_call_operand.vmem [shape: f32[512,8], index: 3, kind: output, shape index: {}]  }
   0x1 LB: > { %s405_s13 = sadd.s32 4294967295, %s433_s12   ;;  %p409_p0 = scmp.ge.s32.totalorder %s433_s12, 1  ;;  %s433_s12 = sphi %s456_s12, %s13_s12  }
   0x2   : > { %p138_p1 = scmp.lt.s32.totalorder %s433_s12, 5 }
   0x4   : > { %p139_p2 = pnand %p409_p0, %p138_p1 }
   0x5   : > { %s410_s14 = sshll.u32 (!%p139_p2), %s405_s13, 4  ;;  %v414_v0 = vld [vmem:[%s585_s1] ss:$0 sm:$0xff] (!%p139_p2)  ;;  %s435_s23 = smov (!%p139_p2), 120   ;;  %vm332_vm0 = vcmask (!%p139_p2), 64512  }
   0x6   : > { %142 = sbr.rel (%p139_p2) target bundleno = 169 (0xa9), region = 32  ;;  %p163_p3 = scmp.lt.s32.totalorder (!%p139_p2), %s410_s14, 63  ;;  %v480_v1 = vld [vmem:[%s586_s2] ss:$0 sm:$0xff] (!%p139_p2) }
   0xd   : > { %s589_s14 = smov (!%p163_p3, %s410_s14), 63 }
   0xe   : > { %s411_s15 = sshll.u32 %s589_s14, 3 }
   0xf   : > { %s475_s20 = scalar_lea.vmem %s584_s0, %s411_s15  ;;  %s544_s26 = scalar_lea.vmem %s587_s3, %s411_s15 }
  0x10   : > { %v176_v2 = vld [vmem:[%s475_s20 + $0x10] sm:$0xff]  ;;  %v174_v3 = vld [vmem:[%s475_s20] sm:$0xff]  ;;  %v177_v4 = vld [vmem:[%s475_s20 + $0x18] sm:$0xff] }
  0x11   : > { %v199_v5 = vmul.f32 %v414_v0, %v176_v2  ;;  %v197_v6 = vmul.f32 %v414_v0, %v174_v3  ;;  %v200_v7 = vmul.f32 %v414_v0, %v177_v4  ;;  %v175_v8 = vld [vmem:[%s475_s20 + $0x8] sm:$0xff]  ;;  %v178_v11 = vld [vmem:[%s475_s20 + $0x20] sm:$0xff]  ;;  %v181_v18 = vld [vmem:[%s475_s20 + $0x38] sm:$0xff] }
  0x12   : > { %v179_v9 = vld [vmem:[%s475_s20 + $0x28] sm:$0xff]  ;;  %v198_v10 = vmul.f32 %v414_v0, %v175_v8  ;;  %v201_v17 = vmul.f32 %v414_v0, %v178_v11  ;;  %v180_v19 = vld [vmem:[%s475_s20 + $0x30] sm:$0xff]  ;;  %v204_v20 = vmul.f32 %v414_v0, %v181_v18  ;;  %v182_v25 = vld [vmem:[%s475_s20 + $0x40] sm:$0xff] }
  0x13   : > { %v222_v12 = vadd.f32 %v480_v1, %v199_v5  ;;  %v220_v13 = vadd.f32 %v480_v1, %v197_v6  ;;  %v202_v14 = vmul.f32 %v414_v0, %v179_v9  ;;  %v223_v15 = vadd.f32 %v480_v1, %v200_v7  ;;  %v183_v24 = vld [vmem:[%s475_s20 + $0x48] sm:$0xff]  ;;  %v185_v30 = vld [vmem:[%s475_s20 + $0x58] sm:$0xff]  ;;  %v184_v31 = vld [vmem:[%s475_s20 + $0x50] sm:$0xff] }
  0x14   : > { %v221_v16 = vadd.f32 %v480_v1, %v198_v10  ;;  %v224_v22 = vadd.f32 %v480_v1, %v201_v17  ;;  %v203_v23 = vmul.f32 %v414_v0, %v180_v19  ;;  %v503_v26 = vadd.f32 %v480_v1, %v204_v20  ;;  %v187_v36 = vld [vmem:[%s475_s20 + $0x68] sm:$0xff]  ;;  %v186_v37 = vld [vmem:[%s475_s20 + $0x60] sm:$0xff]  ;;  %v189_v42 = vld [vmem:[%s475_s20 + $0x78] sm:$0xff] }
  0x15   : > { %256 = vrot.lane.b32.xlu1 %v222_v12, %s435_s23  ;;  %252 = vrot.lane.b32.xlu0 %v220_v13, %s435_s23  ;;  %v225_v21 = vadd.f32 %v480_v1, %v202_v14  ;;  %v206_v28 = vmul.f32 %v414_v0, %v183_v24  ;;  %v205_v29 = vmul.f32 %v414_v0, %v182_v25  ;;  %v188_v43 = vld [vmem:[%s475_s20 + $0x70] sm:$0xff] }
  0x16   : > { %v226_v27 = vadd.f32 %v480_v1, %v203_v23  ;;  %v208_v32 = vmul.f32 %v414_v0, %v185_v30  ;;  %v207_v35 = vmul.f32 %v414_v0, %v184_v31  ;;  %v210_v38 = vmul.f32 %v414_v0, %v187_v36 }
  0x17   : > { %v229_v33 = vadd.f32 %v480_v1, %v206_v28  ;;  %v228_v34 = vadd.f32 %v480_v1, %v205_v29  ;;  %v209_v41 = vmul.f32 %v414_v0, %v186_v37  ;;  %v212_v44 = vmul.f32 %v414_v0, %v189_v42 }
  0x18   : > { %v231_v39 = vadd.f32 %v480_v1, %v208_v32  ;;  %v230_v40 = vadd.f32 %v480_v1, %v207_v35  ;;  %v233_v45 = vadd.f32 %v480_v1, %v210_v38  ;;  %v211_v47 = vmul.f32 %v414_v0, %v188_v43 }
  0x19   : > { %258 = vrot.lane.b32.xlu1 %v223_v15, %s435_s23  ;;  %254 = vrot.lane.b32.xlu0 %v221_v16, %s435_s23  ;;  %v232_v46 = vadd.f32 %v480_v1, %v209_v41  ;;  %v530_v48 = vadd.f32 %v480_v1, %v212_v44 }
  0x1a   : > { %v533_v49 = vadd.f32 %v480_v1, %v211_v47 }
  0x1d   : > { %262 = vrot.lane.b32.xlu1 %v225_v21, %s435_s23  ;;  %260 = vrot.lane.b32.xlu0 %v224_v22, %s435_s23 }
  0x21   : > { %266 = vrot.lane.b32.xlu1 %v503_v26, %s435_s23  ;;  %264 = vrot.lane.b32.xlu0 %v226_v27, %s435_s23 }
  0x25   : > { %270 = vrot.lane.b32.xlu1 %v229_v33, %s435_s23  ;;  %268 = vrot.lane.b32.xlu0 %v228_v34, %s435_s23 }
  0x29   : > { %274 = vrot.lane.b32.xlu1 %v231_v39, %s435_s23  ;;  %272 = vrot.lane.b32.xlu0 %v230_v40, %s435_s23 }
  0x2d   : > { %278 = vrot.lane.b32.xlu1 %v233_v45, %s435_s23  ;;  %276 = vrot.lane.b32.xlu0 %v232_v46, %s435_s23 }
  0x31   : > { %282 = vrot.lane.b32.xlu1 %v530_v48, %s435_s23  ;;  %280 = vrot.lane.b32.xlu0 %v533_v49, %s435_s23 }
  0x87   : > { %v257_v50 = vpop.permute.xlu1 %256  ;;  %v253_v51 = vpop.permute.xlu0 %252 }
  0x88   : > { %v302_v52 = vadd.f32 %v257_v50, %v222_v12  ;;  %v300_v53 = vadd.f32 %v253_v51, %v220_v13 }
  0x8a   : > { %v318_v54 = vmax.f32 %v302_v52, 0.0  ;;  %v316_v55 = vmax.f32 %v300_v53, 0.0 }
  0x8b   : > { %v259_v56 = vpop.permute.xlu1 %258  ;;  %v255_v57 = vpop.permute.xlu0 %254 }
  0x8c   : > { %335 = vst.msk [vmem:[%s544_s26 + $0x10] sm:$0xff] %vm332_vm0, %v318_v54  ;;  %333 = vst.msk [vmem:[%s544_s26] sm:$0xff] %vm332_vm0, %v316_v55  ;;  %v303_v58 = vadd.f32 %v259_v56, %v223_v15  ;;  %v301_v59 = vadd.f32 %v255_v57, %v221_v16 }
  0x8e   : > { %v319_v60 = vmax.f32 %v303_v58, 0.0  ;;  %v317_v61 = vmax.f32 %v301_v59, 0.0 }
  0x8f   : > { %v263_v62 = vpop.permute.xlu1 %262  ;;  %v261_v63 = vpop.permute.xlu0 %260 }
  0x90   : > { %336 = vst.msk [vmem:[%s544_s26 + $0x18] sm:$0xff] %vm332_vm0, %v319_v60  ;;  %334 = vst.msk [vmem:[%s544_s26 + $0x8] sm:$0xff] %vm332_vm0, %v317_v61  ;;  %v305_v0 = vadd.f32 %v263_v62, %v225_v21  ;;  %v304_v1 = vadd.f32 %v261_v63, %v224_v22 }
  0x92   : > { %v321_v2 = vmax.f32 %v305_v0, 0.0  ;;  %v320_v3 = vmax.f32 %v304_v1, 0.0 }
  0x93   : > { %v267_v4 = vpop.permute.xlu1 %266  ;;  %v265_v5 = vpop.permute.xlu0 %264 }
  0x94   : > { %338 = vst.msk [vmem:[%s544_s26 + $0x28] sm:$0xff] %vm332_vm0, %v321_v2  ;;  %337 = vst.msk [vmem:[%s544_s26 + $0x20] sm:$0xff] %vm332_vm0, %v320_v3  ;;  %v307_v6 = vadd.f32 %v267_v4, %v503_v26  ;;  %v306_v7 = vadd.f32 %v265_v5, %v226_v27 }
  0x96   : > { %v323_v8 = vmax.f32 %v307_v6, 0.0  ;;  %v322_v9 = vmax.f32 %v306_v7, 0.0 }
  0x97   : > { %v271_v10 = vpop.permute.xlu1 %270  ;;  %v269_v11 = vpop.permute.xlu0 %268 }
  0x98   : > { %340 = vst.msk [vmem:[%s544_s26 + $0x38] sm:$0xff] %vm332_vm0, %v323_v8  ;;  %339 = vst.msk [vmem:[%s544_s26 + $0x30] sm:$0xff] %vm332_vm0, %v322_v9  ;;  %v309_v12 = vadd.f32 %v271_v10, %v229_v33  ;;  %v308_v13 = vadd.f32 %v269_v11, %v228_v34 }
  0x9a   : > { %v325_v14 = vmax.f32 %v309_v12, 0.0  ;;  %v324_v15 = vmax.f32 %v308_v13, 0.0 }
  0x9b   : > { %v275_v16 = vpop.permute.xlu1 %274  ;;  %v273_v17 = vpop.permute.xlu0 %272 }
  0x9c   : > { %342 = vst.msk [vmem:[%s544_s26 + $0x48] sm:$0xff] %vm332_vm0, %v325_v14  ;;  %341 = vst.msk [vmem:[%s544_s26 + $0x40] sm:$0xff] %vm332_vm0, %v324_v15  ;;  %v311_v18 = vadd.f32 %v275_v16, %v231_v39  ;;  %v310_v19 = vadd.f32 %v273_v17, %v230_v40 }
  0x9e   : > { %v327_v20 = vmax.f32 %v311_v18, 0.0  ;;  %v326_v21 = vmax.f32 %v310_v19, 0.0 }
  0x9f   : > { %v279_v22 = vpop.permute.xlu1 %278  ;;  %v277_v23 = vpop.permute.xlu0 %276 }
  0xa0   : > { %344 = vst.msk [vmem:[%s544_s26 + $0x58] sm:$0xff] %vm332_vm0, %v327_v20  ;;  %343 = vst.msk [vmem:[%s544_s26 + $0x50] sm:$0xff] %vm332_vm0, %v326_v21  ;;  %v313_v24 = vadd.f32 %v279_v22, %v233_v45  ;;  %v312_v25 = vadd.f32 %v277_v23, %v232_v46 }
  0xa2   : > { %v329_v26 = vmax.f32 %v313_v24, 0.0  ;;  %v328_v27 = vmax.f32 %v312_v25, 0.0 }
  0xa3   : > { %v283_v28 = vpop.permute.xlu1 %282  ;;  %v281_v29 = vpop.permute.xlu0 %280 }
  0xa4   : > { %346 = vst.msk [vmem:[%s544_s26 + $0x68] sm:$0xff] %vm332_vm0, %v329_v26  ;;  %345 = vst.msk [vmem:[%s544_s26 + $0x60] sm:$0xff] %vm332_vm0, %v328_v27  ;;  %v315_v30 = vadd.f32 %v283_v28, %v530_v48  ;;  %v314_v31 = vadd.f32 %v281_v29, %v533_v49 }
  0xa6   : > { %v331_v32 = vmax.f32 %v315_v30, 0.0  ;;  %v330_v33 = vmax.f32 %v314_v31, 0.0 }
  0xa8   : > { %348 = vst.msk [vmem:[%s544_s26 + $0x78] sm:$0xff] %vm332_vm0, %v331_v32  ;;  %347 = vst.msk [vmem:[%s544_s26 + $0x70] sm:$0xff] %vm332_vm0, %v330_v33 }
  0xa9 PF: > { %s13_s12 = sadd.s32 1, %s433_s12  }
  0xaa   : > { %p10_p4 = scmp.ge.s32.totalorder %s13_s12, 6  }
  0xac   :  { %12 = sbr.rel (!%p10_p4) target bundleno = 1 (0x1), region = 62 }

</bundles_post_ra>
